<compile_context>
chip_gen: v7x
topology: tpu7x:2x2x1
jax: 0.10.0
libtpu: 0.0.40
codegen_flags: <defaults>
</compile_context>

<pallas_src>
import jax
import jax.numpy as jnp
from jax import lax
from jax.experimental import pallas as pl
from jax.experimental.pallas import tpu as pltpu

LANE = 128      # TPU lane width; hidden dims are padded to a multiple of this.
TB_CAP = 2048   # VMEM-safe batch-tile ceiling across v5e/v6e/v7x default scoped limits.


def _round_up(n, m):
    return (n + m - 1) // m * m


# ----------------------------------------------------------------------------- kernel
def mlp_kernel(x_ref,
               w1_ref, b1_ref,
               w2_ref, b2_ref,
               w3_ref, b3_ref,
               w4_ref, b4_ref,
               o_ref):
    # One (TB, in_dim) batch tile through the fused 4-layer MLP.
    x = x_ref[...].astype(jnp.bfloat16)

    h = jnp.dot(x, w1_ref[...], preferred_element_type=jnp.float32) + b1_ref[...]
    h = jnp.maximum(h, 0.0)

    h = jnp.dot(h.astype(jnp.bfloat16), w2_ref[...],
                preferred_element_type=jnp.float32) + b2_ref[...]
    h = jnp.maximum(h, 0.0)

    h = jnp.dot(h.astype(jnp.bfloat16), w3_ref[...],
                preferred_element_type=jnp.float32) + b3_ref[...]
    h = jnp.maximum(h, 0.0)

    # Final (width -> 1) layer, emitted lane-dense: contract the padded hidden axis
    # of BOTH operands (A @ B^T form, same pattern as flash-attention q@k^T) so the
    # MXU writes an (8, TB) row block directly -- no (TB,1) column, no in-kernel
    # transpose, no masked 1-lane stores.  Rows 1..7 of w4 are zero padding.
    out8 = lax.dot_general(
        w4_ref[...], h.astype(jnp.bfloat16),
        dimension_numbers=(((1,), (1,)), ((), ())),
        preferred_element_type=jnp.float32)                 # (8, TB)
    o_ref[...] = (out8[0:1, :] + b4_ref[0]).astype(o_ref.dtype)   # (1, TB)


# ----------------------------------------------------------------------------- wrapper
def prepare_params(params):
    """One-time prep outside the hot path.

    Transposes PyTorch-convention (out, in) weights to (in, out), zero-pads the
    hidden width up to a multiple of 128 and casts matmul weights to bf16.
    Zero padding is exact: padded hidden columns stay 0 through bias (padded 0)
    and ReLU, and contribute nothing downstream.
    """
    width = params["w1"].shape[0]
    wp = _round_up(width, LANE)
    in_dim = params["w1"].shape[1]

    def pad_to(a, rows, cols):
        return jnp.pad(a, ((0, rows - a.shape[0]), (0, cols - a.shape[1])))

    w1 = pad_to(params["w1"].T, in_dim, wp).astype(jnp.bfloat16)          # (in, wp)
    w2 = pad_to(params["w2"].T, wp, wp).astype(jnp.bfloat16)              # (wp, wp)
    w3 = pad_to(params["w3"].T, wp, wp).astype(jnp.bfloat16)              # (wp, wp)

    def pad_bias(b):
        return jnp.pad(b, (0, wp - width)).reshape(1, wp).astype(jnp.float32)

    b1, b2, b3 = pad_bias(params["b1"]), pad_bias(params["b2"]), pad_bias(params["b3"])

    # layer4 weight as an (8, wp) bf16 block: row 0 = real weights, rows 1..7 zero.
    w4_row = jnp.pad(params["w4"].reshape(1, width), ((0, 0), (0, wp - width)))
    w4 = jnp.concatenate([w4_row, jnp.zeros((7, wp), w4_row.dtype)],
                         axis=0).astype(jnp.bfloat16)                     # (8, wp)
    b4 = params["b4"].reshape(1).astype(jnp.float32)                      # (1,) -> SMEM
    return dict(w1=w1, b1=b1, w2=w2, b2=b2, w3=w3, b3=b3, w4=w4, b4=b4)


def _choose_tile(B, tb_max):
    """Pick (tile_rows, padded_batch).  Tiles are 8-aligned (128-aligned when gridded),
    target ~2-8 grid steps so per-step overhead amortizes and both v7x TCs get work."""
    b8 = _round_up(B, 8)
    if b8 <= 512:
        return b8, b8                              # single small tile, grid = 1
    tb_max = _round_up(max(LANE, min(tb_max, TB_CAP)), LANE)
    tb = min(_round_up((b8 + 1) // 2, LANE), tb_max)   # prefer >=2 steps
    return tb, _round_up(b8, tb)


def mlp_forward(x, prepped, tb=1024):
    """x: (B, in_dim) f32.  prepped: output of prepare_params.  tb: max batch tile."""
    B, in_dim = x.shape
    wp = prepped["w1"].shape[1]

    tb_eff, b_pad = _choose_tile(B, tb)
    xp = jnp.pad(x, ((0, b_pad - B), (0, 0))) if b_pad != B else x
    n_tiles = b_pad // tb_eff

    def const_spec(a):  # whole array, DMA'd once (constant block index), VMEM-resident
        return pl.BlockSpec(a.shape, lambda i: (0, 0))

    flops = 2 * b_pad * wp * (in_dim + 2 * wp + 8)
    bytes_accessed = int(xp.size * 4 + b_pad * 4 +
                         sum(int(v.size) * v.dtype.itemsize for v in prepped.values()))

    out = pl.pallas_call(
        mlp_kernel,
        out_shape=jax.ShapeDtypeStruct((1, b_pad), jnp.float32),   # lane-dense row
        grid=(n_tiles,),
        in_specs=[
            pl.BlockSpec((tb_eff, in_dim), lambda i: (i, 0)),      # pipelined x tile
            const_spec(prepped["w1"]), const_spec(prepped["b1"]),
            const_spec(prepped["w2"]), const_spec(prepped["b2"]),
            const_spec(prepped["w3"]), const_spec(prepped["b3"]),
            const_spec(prepped["w4"]),
            pl.BlockSpec(memory_space=pltpu.MemorySpace.SMEM),     # (1,) scalar bias
        ],
        out_specs=pl.BlockSpec((1, tb_eff), lambda i: (0, i)),     # lane-dense stores
        compiler_params=pltpu.CompilerParams(
            dimension_semantics=("parallel",)),                    # megacore on v7x
        cost_estimate=pl.CostEstimate(flops=flops, transcendentals=0,
                                      bytes_accessed=bytes_accessed),
    )(xp, prepped["w1"], prepped["b1"], prepped["w2"], prepped["b2"],
      prepped["w3"], prepped["b3"], prepped["w4"], prepped["b4"])

    return out.reshape(b_pad, 1)[:B]


# ----------------------------------------------------------------------------- references
def mlp_reference_f32(x, p):
    """Pure f32 PyTorch-semantics reference."""
    h = jnp.maximum(x @ p["w1"].T + p["b1"], 0.0)
    h = jnp.maximum(h @ p["w2"].T + p["b2"], 0.0)
    h = jnp.maximum(h @ p["w3"].T + p["b3"], 0.0)
    return h @ p["w4"].T + p["b4"]


def mlp_reference_bf16(x, prepped):
    """Reference emulating the kernel's bf16-operand / f32-accumulate numerics."""
    bf = jnp.bfloat16
    h = jnp.dot(x.astype(bf), prepped["w1"], preferred_element_type=jnp.float32) + prepped["b1"]
    h = jnp.maximum(h, 0.0)
    h = jnp.dot(h.astype(bf), prepped["w2"], preferred_element_type=jnp.float32) + prepped["b2"]
    h = jnp.maximum(h, 0.0)
    h = jnp.dot(h.astype(bf), prepped["w3"], preferred_element_type=jnp.float32) + prepped["b3"]
    h = jnp.maximum(h, 0.0)
    out = lax.dot_general(h.astype(bf), prepped["w4"],
                          dimension_numbers=(((1,), (1,)), ((), ())),
                          preferred_element_type=jnp.float32)[:, 0:1]
    return out + prepped["b4"][0]


# ----------------------------------------------------------------------------- init
def init_params(key, input_dim, width):
    """Deterministic init mimicking nn.Linear default (uniform +/- 1/sqrt(fan_in))."""
    ks = jax.random.split(key, 8)

    def linear(kw, kb, fan_in, fan_out):
        bound = 1.0 / (fan_in ** 0.5)
        w = jax.random.uniform(kw, (fan_out, fan_in), jnp.float32, -bound, bound)
        b = jax.random.uniform(kb, (fan_out,), jnp.float32, -bound, bound)
        return w, b

    w1, b1 = linear(ks[0], ks[1], input_dim, width)
    w2, b2 = linear(ks[2], ks[3], width, width)
    w3, b3 = linear(ks[4], ks[5], width, width)
    w4, b4 = linear(ks[6], ks[7], width, 1)
    return dict(w1=w1, b1=b1, w2=w2, b2=b2, w3=w3, b3=b3, w4=w4, b4=b4)


if __name__ == "__main__":
    key = jax.random.PRNGKey(0)
    k_x, k_x2, k_p = jax.random.split(key, 3)

    batch = 8
    input_dim = 16   # stand-in for X_train.shape[1] (CSV-derived feature count)
    width = 64       # default width in the module (zero-padded to 128 internally)

    params = init_params(k_p, input_dim, width)
    prepped = prepare_params(params)   # one-time: transpose + pad + bf16 cast

    fwd = jax.jit(mlp_forward, static_argnames=("tb",))

    # --- small batch (single 8-row tile, grid = 1) ---
    x = jax.random.normal(k_x, (batch, input_dim), jnp.float32)
    out = jax.block_until_ready(fwd(x, prepped))
    assert out.shape == (batch, 1), out.shape
    assert jnp.allclose(out, mlp_reference_bf16(x, prepped), atol=2e-3, rtol=2e-3), \
        "mismatch vs bf16-emulating reference"
    assert jnp.allclose(out, mlp_reference_f32(x, params), atol=5e-2, rtol=5e-2), \
        "mismatch vs f32 reference"

    # --- larger batch exercising the multi-step pipelined grid + batch padding ---
    x2 = jax.random.normal(k_x2, (2600, input_dim), jnp.float32)
    out2 = jax.block_until_ready(fwd(x2, prepped))
    assert out2.shape == (2600, 1), out2.shape
    assert jnp.allclose(out2, mlp_reference_bf16(x2, prepped), atol=2e-3, rtol=2e-3), \
        "mismatch vs bf16-emulating reference (gridded)"
    assert jnp.allclose(out2, mlp_reference_f32(x2, params), atol=5e-2, rtol=5e-2), \
        "mismatch vs f32 reference (gridded)"

    print("KERNEL_OK")
</pallas_src>

<mosaic_0001>
module attributes {stable_mosaic.version = 11 : i64} {
  func.func @mlp_kernel(%arg0: i32, %arg1: memref<8x16xf32, #tpu.memory_space<vmem>>, %arg2: memref<16x128xbf16, #tpu.memory_space<vmem>>, %arg3: memref<1x128xf32, #tpu.memory_space<vmem>>, %arg4: memref<128x128xbf16, #tpu.memory_space<vmem>>, %arg5: memref<1x128xf32, #tpu.memory_space<vmem>>, %arg6: memref<128x128xbf16, #tpu.memory_space<vmem>>, %arg7: memref<1x128xf32, #tpu.memory_space<vmem>>, %arg8: memref<8x128xbf16, #tpu.memory_space<vmem>>, %arg9: memref<1xf32, #tpu.memory_space<smem>>, %arg10: memref<1x8xf32, #tpu.memory_space<vmem>>) attributes {dimension_semantics = [#tpu.dimension_semantics<parallel>], iteration_bounds = array<i64: 1>, scalar_prefetch = 0 : i64, scratch_operands = 0 : i64, tpu.core_type = #tpu.core_type<tc>, window_params = [{transform_indices = @transform_0, window_bounds = array<i64: 8, 16>}, {pipeline_mode = #tpu.pipeline_mode<synchronous>, transform_indices = @transform_1, window_bounds = array<i64: 16, 128>}, {pipeline_mode = #tpu.pipeline_mode<synchronous>, transform_indices = @transform_2, window_bounds = array<i64: 1, 128>}, {pipeline_mode = #tpu.pipeline_mode<synchronous>, transform_indices = @transform_3, window_bounds = array<i64: 128, 128>}, {pipeline_mode = #tpu.pipeline_mode<synchronous>, transform_indices = @transform_4, window_bounds = array<i64: 1, 128>}, {pipeline_mode = #tpu.pipeline_mode<synchronous>, transform_indices = @transform_5, window_bounds = array<i64: 128, 128>}, {pipeline_mode = #tpu.pipeline_mode<synchronous>, transform_indices = @transform_6, window_bounds = array<i64: 1, 128>}, {pipeline_mode = #tpu.pipeline_mode<synchronous>, transform_indices = @transform_7, window_bounds = array<i64: 8, 128>}, {transform_indices = @transform_8, window_bounds = array<i64: 1>}, {transform_indices = @transform_9, window_bounds = array<i64: 1, 8>}]} {
    %c0 = arith.constant 0 : index
    %c0_0 = arith.constant 0 : index
    %0 = vector.load %arg1[%c0, %c0_0] : memref<8x16xf32, #tpu.memory_space<vmem>>, vector<8x16xf32>
    %1 = arith.truncf %0 : vector<8x16xf32> to vector<8x16xbf16>
    %c0_1 = arith.constant 0 : index
    %c0_2 = arith.constant 0 : index
    %2 = vector.load %arg2[%c0_1, %c0_2] : memref<16x128xbf16, #tpu.memory_space<vmem>>, vector<16x128xbf16>
    %cst = arith.constant dense<0.000000e+00> : vector<8x128xf32>
    %3 = tpu.matmul %1, %2, %cst {dimension_numbers = #tpu.dot_dimension_numbers<[1], [0], [0], [1], [0, 0, 1, 1], [], []>} : vector<8x16xbf16>, vector<16x128xbf16>, vector<8x128xf32> -> vector<8x128xf32>
    %c0_3 = arith.constant 0 : index
    %c0_4 = arith.constant 0 : index
    %4 = vector.load %arg3[%c0_3, %c0_4] : memref<1x128xf32, #tpu.memory_space<vmem>>, vector<1x128xf32>
    %5 = vector.broadcast %4 : vector<1x128xf32> to vector<8x128xf32>
    %6 = arith.addf %3, %5 : vector<8x128xf32>
    %cst_5 = arith.constant 0.000000e+00 : f32
    %7 = vector.broadcast %cst_5 : f32 to vector<8x128xf32>
    %8 = arith.maximumf %6, %7 : vector<8x128xf32>
    %9 = arith.truncf %8 : vector<8x128xf32> to vector<8x128xbf16>
    %c0_6 = arith.constant 0 : index
    %c0_7 = arith.constant 0 : index
    %10 = vector.load %arg4[%c0_6, %c0_7] : memref<128x128xbf16, #tpu.memory_space<vmem>>, vector<128x128xbf16>
    %cst_8 = arith.constant dense<0.000000e+00> : vector<8x128xf32>
    %11 = tpu.matmul %9, %10, %cst_8 {dimension_numbers = #tpu.dot_dimension_numbers<[1], [0], [0], [1], [0, 0, 1, 1], [], []>} : vector<8x128xbf16>, vector<128x128xbf16>, vector<8x128xf32> -> vector<8x128xf32>
    %c0_9 = arith.constant 0 : index
    %c0_10 = arith.constant 0 : index
    %12 = vector.load %arg5[%c0_9, %c0_10] : memref<1x128xf32, #tpu.memory_space<vmem>>, vector<1x128xf32>
    %13 = vector.broadcast %12 : vector<1x128xf32> to vector<8x128xf32>
    %14 = arith.addf %11, %13 : vector<8x128xf32>
    %cst_11 = arith.constant 0.000000e+00 : f32
    %15 = vector.broadcast %cst_11 : f32 to vector<8x128xf32>
    %16 = arith.maximumf %14, %15 : vector<8x128xf32>
    %17 = arith.truncf %16 : vector<8x128xf32> to vector<8x128xbf16>
    %c0_12 = arith.constant 0 : index
    %c0_13 = arith.constant 0 : index
    %18 = vector.load %arg6[%c0_12, %c0_13] : memref<128x128xbf16, #tpu.memory_space<vmem>>, vector<128x128xbf16>
    %cst_14 = arith.constant dense<0.000000e+00> : vector<8x128xf32>
    %19 = tpu.matmul %17, %18, %cst_14 {dimension_numbers = #tpu.dot_dimension_numbers<[1], [0], [0], [1], [0, 0, 1, 1], [], []>} : vector<8x128xbf16>, vector<128x128xbf16>, vector<8x128xf32> -> vector<8x128xf32>
    %c0_15 = arith.constant 0 : index
    %c0_16 = arith.constant 0 : index
    %20 = vector.load %arg7[%c0_15, %c0_16] : memref<1x128xf32, #tpu.memory_space<vmem>>, vector<1x128xf32>
    %21 = vector.broadcast %20 : vector<1x128xf32> to vector<8x128xf32>
    %22 = arith.addf %19, %21 : vector<8x128xf32>
    %cst_17 = arith.constant 0.000000e+00 : f32
    %23 = vector.broadcast %cst_17 : f32 to vector<8x128xf32>
    %24 = arith.maximumf %22, %23 : vector<8x128xf32>
    %c0_18 = arith.constant 0 : index
    %c0_19 = arith.constant 0 : index
    %25 = vector.load %arg8[%c0_18, %c0_19] : memref<8x128xbf16, #tpu.memory_space<vmem>>, vector<8x128xbf16>
    %26 = arith.truncf %24 : vector<8x128xf32> to vector<8x128xbf16>
    %cst_20 = arith.constant dense<0.000000e+00> : vector<8x8xf32>
    %27 = tpu.matmul %25, %26, %cst_20 {dimension_numbers = #tpu.dot_dimension_numbers<[1], [1], [0], [0], [0, 0, 1, 0], [], []>} : vector<8x128xbf16>, vector<8x128xbf16>, vector<8x8xf32> -> vector<8x8xf32>
    %28 = vector.extract_strided_slice %27 {offsets = [0, 0], sizes = [1, 8], strides = [1, 1]} : vector<8x8xf32> to vector<1x8xf32>
    %c0_21 = arith.constant 0 : index
    %29 = memref.load %arg9[%c0_21] : memref<1xf32, #tpu.memory_space<smem>>
    %30 = vector.broadcast %29 : f32 to vector<1x8xf32>
    %31 = arith.addf %28, %30 : vector<1x8xf32>
    %c0_22 = arith.constant 0 : index
    %c0_23 = arith.constant 0 : index
    %32 = vector.load %arg10[%c0_22, %c0_23] : memref<1x8xf32, #tpu.memory_space<vmem>>, vector<1x8xf32>
    tpu.vector_store %arg10[%c0_22, %c0_23], %31 {strides = array<i32>} : memref<1x8xf32, #tpu.memory_space<vmem>>, vector<1x8xf32>,
    return
  }
  func.func @transform_0(%arg0: i32) -> (i32, i32) {
    %c0_i32 = arith.constant 0 : i32
    %c0_i32_0 = arith.constant 0 : i32
    return %arg0, %c0_i32 : i32, i32
  }
  func.func @transform_1(%arg0: i32) -> (i32, i32) {
    %c0_i32 = arith.constant 0 : i32
    %c0_i32_0 = arith.constant 0 : i32
    %c0_i32_1 = arith.constant 0 : i32
    return %c0_i32, %c0_i32_0 : i32, i32
  }
  func.func @transform_2(%arg0: i32) -> (i32, i32) {
    %c0_i32 = arith.constant 0 : i32
    %c0_i32_0 = arith.constant 0 : i32
    %c0_i32_1 = arith.constant 0 : i32
    return %c0_i32, %c0_i32_0 : i32, i32
  }
  func.func @transform_3(%arg0: i32) -> (i32, i32) {
    %c0_i32 = arith.constant 0 : i32
    %c0_i32_0 = arith.constant 0 : i32
    %c0_i32_1 = arith.constant 0 : i32
    return %c0_i32, %c0_i32_0 : i32, i32
  }
  func.func @transform_4(%arg0: i32) -> (i32, i32) {
    %c0_i32 = arith.constant 0 : i32
    %c0_i32_0 = arith.constant 0 : i32
    %c0_i32_1 = arith.constant 0 : i32
    return %c0_i32, %c0_i32_0 : i32, i32
  }
  func.func @transform_5(%arg0: i32) -> (i32, i32) {
    %c0_i32 = arith.constant 0 : i32
    %c0_i32_0 = arith.constant 0 : i32
    %c0_i32_1 = arith.constant 0 : i32
    return %c0_i32, %c0_i32_0 : i32, i32
  }
  func.func @transform_6(%arg0: i32) -> (i32, i32) {
    %c0_i32 = arith.constant 0 : i32
    %c0_i32_0 = arith.constant 0 : i32
    %c0_i32_1 = arith.constant 0 : i32
    return %c0_i32, %c0_i32_0 : i32, i32
  }
  func.func @transform_7(%arg0: i32) -> (i32, i32) {
    %c0_i32 = arith.constant 0 : i32
    %c0_i32_0 = arith.constant 0 : i32
    %c0_i32_1 = arith.constant 0 : i32
    return %c0_i32, %c0_i32_0 : i32, i32
  }
  func.func @transform_8(%arg0: i32) -> i32 {
    %c0_i32 = arith.constant 0 : i32
    %c0_i32_0 = arith.constant 0 : i32
    return %c0_i32 : i32
  }
  func.func @transform_9(%arg0: i32) -> (i32, i32) {
    %c0_i32 = arith.constant 0 : i32
    %c0_i32_0 = arith.constant 0 : i32
    return %c0_i32, %arg0 : i32, i32
  }
}

</mosaic_0001>

<bundles_post_ra>
// kernel: mlp_forward.1
= control target key start
LH: loop header
LB: loop body
LE: loop exit
PB: predicated region body
PF: predicated region fallthrough
CT: control target
= control target key end

     0   :  { %15 = vsyncpa [#allocation4], 0  ;;  %s795_s0 = inlined_call_operand.hbm [shape: f32[8,16], index: 0, kind: input, shape index: {}]   ;;  %s796_s1 = inlined_call_operand.vmem [shape: bf16[16,128], index: 1, kind: input, shape index: {}]   ;;  %s797_s2 = inlined_call_operand.vmem [shape: f32[1,128], index: 2, kind: input, shape index: {}]   ;;  %s798_s3 = inlined_call_operand.hbm [shape: bf16[128,128], index: 3, kind: input, shape index: {}]   ;;  %s799_s4 = inlined_call_operand.vmem [shape: f32[1,128], index: 4, kind: input, shape index: {}]   ;;  %s800_s5 = inlined_call_operand.hbm [shape: bf16[128,128], index: 5, kind: input, shape index: {}]   ;;  %s801_s6 = inlined_call_operand.vmem [shape: f32[1,128], index: 6, kind: input, shape index: {}]   ;;  %s802_s7 = inlined_call_operand.vmem [shape: bf16[8,128], index: 7, kind: input, shape index: {}]   ;;  %s803_s8 = inlined_call_operand.<no memory space> [shape: f32[1], index: 8, kind: input, shape index: {}]   ;;  %s804_s9 = inlined_call_operand.hbm [shape: f32[1,8], index: 9, kind: output, shape index: {}]  }
   0x1   :  { %16 = vsyncpa [#allocation7], 0 }
   0x2   :  { %17 = vsyncpa [#allocation5], 0  ;;  %s639_s30 = smov [#allocation6]   ;;  %s545_s13 = scalar_lea.hbm %s798_s3, 1024 }
   0x3   :  { %s37_s10 = sshll.u32 %s639_s30, 4  ;;  %p546_p0 = scmp.ne.s32.totalorder %s798_s3, %s545_s13  ;;  %s38_s10 = int_to_ptr.vmem [resolvable:$true] %s37_s10 }
   0x4   :  { %p549_p1 = scmp.lt.u32.totalorder %s545_s13, %s798_s3 }
   0x6   :  { %p551_p2 = pnand %p549_p1, %p546_p0 }
   0x8   :  { %554 = shalt.err (!%p551_p2)
}
   0x9   :  { %s555_s18 = scalar_lea.vmem %s38_s10, 1024  ;;  %p560_p4 = scmp.lt.s32.totalorder %s38_s10, %s38_s10 }
   0xa   :  { %p556_p3 = scmp.ne.s32.totalorder %s38_s10, %s555_s18  ;;  %p561_p5 = scmp.lt.s32.totalorder %s555_s18, %s555_s18 }
   0xc   :  { %p562_p6 = por %p561_p5, %p560_p4 }
   0xe   :  { %p563_p7 = pnand %p562_p6, %p556_p3 }
  0x10   :  { %566 = shalt.err (!%p563_p7)
}
  0x11   :  { %s640_s19 = smov 64   ;;  %s641_s20 = smov 4  }
  0x12   :  { %43 = dma.hbm_to_vmem [thread:$0]  %s798_s3, 1024, %s38_s10, [#allocation7], %s640_s19, %s640_s19, %s641_s20  }
  0x13   :  { %s642_s23 = smov [#allocation3]   ;;  %s643_s25 = smov [#allocation8]  }
  0x14   :  { %s24_s24 = sshll.u32 %s642_s23, 4  ;;  %s51_s26 = sshll.u32 %s643_s25, 4  ;;  %s25_s24 = int_to_ptr.vmem [resolvable:$true] %s24_s24  ;;  %s52_s26 = int_to_ptr.vmem [resolvable:$true] %s51_s26 }
  0x15   :  { %s567_s29 = scalar_lea.hbm %s795_s0, 128 }
  0x16   :  { %p568_p8 = scmp.ne.s32.totalorder %s795_s0, %s567_s29  ;;  %p571_p9 = scmp.lt.u32.totalorder %s567_s29, %s795_s0 }
  0x18   :  { %p573_p10 = pnand %p571_p9, %p568_p8 }
  0x1a   :  { %576 = shalt.err (!%p573_p10)
}
  0x1b   :  { %s577_s3 = scalar_lea.vmem %s25_s24, 128  ;;  %p582_p12 = scmp.lt.s32.totalorder %s25_s24, %s25_s24 }
  0x1c   :  { %p578_p11 = scmp.ne.s32.totalorder %s25_s24, %s577_s3  ;;  %p583_p13 = scmp.lt.s32.totalorder %s577_s3, %s577_s3 }
  0x1e   :  { %p584_p0 = por %p583_p13, %p582_p12 }
  0x20   :  { %p585_p1 = pnand %p584_p0, %p578_p11 }
  0x22   :  { %588 = shalt.err (!%p585_p1)
}
  0x23   :  { %27 = dma.hbm_to_vmem [thread:$0]  %s795_s0, 128, %s25_s24, [#allocation4]  }
  0x24   :  { %s589_s17 = scalar_lea.hbm %s800_s5, 1024 }
  0x25   :  { %p590_p2 = scmp.ne.s32.totalorder %s800_s5, %s589_s17  ;;  %p593_p3 = scmp.lt.u32.totalorder %s589_s17, %s800_s5 }
  0x27   :  { %p595_p4 = pnand %p593_p3, %p590_p2 }
  0x29   :  { %598 = shalt.err (!%p595_p4)
}
  0x2a   :  { %s599_s25 = scalar_lea.vmem %s52_s26, 1024  ;;  %p604_p6 = scmp.lt.s32.totalorder %s52_s26, %s52_s26 }
  0x2b   :  { %p600_p5 = scmp.ne.s32.totalorder %s52_s26, %s599_s25  ;;  %p605_p7 = scmp.lt.s32.totalorder %s599_s25, %s599_s25 }
  0x2d   :  { %p606_p8 = por %p605_p7, %p604_p6 }
  0x2f   :  { %p607_p9 = pnand %p606_p8, %p600_p5 }
  0x31   :  { %610 = shalt.err (!%p607_p9)
}
  0x32   :  { %57 = dma.hbm_to_vmem [thread:$0]  %s800_s5, 1024, %s52_s26, [#allocation7], %s640_s19, %s640_s19, %s641_s20  }
  0x33   :  { %633 = dma.done.wait [#allocation4], 128  }
  0x34   :  { %634 = vsyncadd [#allocation4], 4294967168 }
  0x35   :  { %635 = dma.done.wait [#allocation7], 2048  }
  0x36   :  { %636 = vsyncadd [#allocation7], 4294965248  ;;  %v644_v0 = vmov 0.0   ;;  %vm645_vm0 = vmmov 0   ;;  %v528_v1 = vld [vmem:[%s796_s1] sm:$0xff]   ;;  %vm91_vm1 = vcmask 130048   ;;  %v405_v45 = vstv %s803_s8 }
  0x37   :  { %468 = vmatprep.subr.bf16.mxu0 %v644_v0  ;;  %470 = vmatprep.mubr.msk.bf16.mxu0 %vm645_vm0, %v644_v0  ;;  %v74_v2 = vld [vmem:[#allocation3] sm:$0xff]  ;;  %v529_v4 = vld [vmem:[#allocation6] sm:$0xff]   ;;  %v530_v5 = vld [vmem:[#allocation6 + $0x8] sm:$0xff]   ;;  %s646_s12 = smov [#allocation9]   ;;  %vm407_vm2 = vcmask 57344  }
  0x38   :  { %474 = vmatprep.subr.bf16.mxu1 %v644_v0  ;;  %490 = vmatprep.mubr.msk.bf16.mxu1 %vm645_vm0, %v644_v0  ;;  %v75_v3 = vpack.c.bf16 %v74_v2, %v74_v2  ;;  %v531_v6 = vld [vmem:[#allocation6 + $0x10] sm:$0xff]   ;;  %v532_v7 = vld [vmem:[#allocation6 + $0x18] sm:$0xff]   ;;  %v533_v8 = vld [vmem:[#allocation6 + $0x20] sm:$0xff]   ;;  %s415_s13 = sshll.u32 %s646_s12, 4  ;;  %s416_s13 = int_to_ptr.vmem [resolvable:$true] %s415_s13 }
  0x39   :  { %469 = vmatpush3.bf16.msra.mxu0 %v528_v1  ;;  %475 = vmatpush3.bf16.msra.mxu1 %v529_v4  ;;  %v534_v9 = vld [vmem:[#allocation6 + $0x28] sm:$0xff]   ;;  %v535_v10 = vld [vmem:[#allocation6 + $0x30] sm:$0xff]   ;;  %v536_v11 = vld [vmem:[#allocation6 + $0x38] sm:$0xff]   ;;  %s615_s3 = scalar_lea.vmem %s416_s13, 32  ;;  %p616_p11 = scmp.lt.s32.totalorder %s416_s13, %s416_s13 }
  0x3a   :  { %494 = vmatprep.subr.bf16.mxu0 %v644_v0  ;;  %476 = vmatprep.subr.bf16.mxu1 %v644_v0  ;;  %v537_v12 = vld [vmem:[#allocation8] sm:$0xff]   ;;  %v538_v13 = vld [vmem:[#allocation8 + $0x8] sm:$0xff]   ;;  %v539_v14 = vld [vmem:[#allocation8 + $0x10] sm:$0xff]  }
  0x3b   :  { %v540_v15 = vld [vmem:[#allocation8 + $0x18] sm:$0xff]   ;;  %v541_v16 = vld [vmem:[#allocation8 + $0x20] sm:$0xff]   ;;  %v542_v17 = vld [vmem:[#allocation8 + $0x28] sm:$0xff]  }
  0x3c   :  { %471 = vmatmul.mubr.msk.bf16.vlgmr.msra.gmra.mrb[0].mxu0 %vm91_vm1, %v75_v3  ;;  %v425_v18 = vld [vmem:[%s797_s2] ss:$0 sm:$0xff]  ;;  %v543_v26 = vld [vmem:[#allocation8 + $0x30] sm:$0xff]  }
  0x3d   :  { %510 = vmatprep.mubr.msk.bf16.mxu0 %vm645_vm0, %v644_v0  ;;  %477 = vmatpush3.bf16.msra.mxu1 %v530_v5  ;;  %v544_v27 = vld [vmem:[#allocation8 + $0x38] sm:$0xff]  }
  0x3e   :  { %478 = vmatprep.subr.bf16.mxu1 %v644_v0  ;;  %495 = vmatpush3.bf16.msra.mxu0 %v537_v12  ;;  %v428_v28 = vld [vmem:[%s799_s4] ss:$0 sm:$0xff] }
  0x3f   :  { %496 = vmatprep.subr.bf16.mxu0 %v644_v0  ;;  %v437_v36 = vld [vmem:[%s801_s6] ss:$0 sm:$0xff]  ;;  %s611_s6 = scalar_lea.vmem %s416_s13, 16 }
  0x40   :  { %v362_v44 = vld [vmem:[%s802_s7] sm:$0xf]  ;;  %p612_p10 = scmp.ne.s32.totalorder %s416_s13, %s611_s6  ;;  %p617_p12 = scmp.lt.s32.totalorder %s615_s3, %s611_s6 }
  0x41   :  { %479 = vmatpush3.bf16.msra.mxu1 %v531_v6 }
  0x42   :  { %480 = vmatprep.subr.bf16.mxu1 %v644_v0  ;;  %497 = vmatpush3.bf16.msra.mxu0 %v538_v13  ;;  %p618_p13 = por %p617_p12, %p616_p11 }
  0x43   :  { %498 = vmatprep.subr.bf16.mxu0 %v644_v0 }
  0x44   :  { %p619_p0 = pnand %p618_p13, %p612_p10 }
  0x45   :  { %481 = vmatpush3.bf16.msra.mxu1 %v532_v7 }
  0x46   :  { %482 = vmatprep.subr.bf16.mxu1 %v644_v0  ;;  %499 = vmatpush3.bf16.msra.mxu0 %v539_v14 }
  0x47   :  { %500 = vmatprep.subr.bf16.mxu0 %v644_v0 }
  0x49   :  { %483 = vmatpush3.bf16.msra.mxu1 %v533_v8 }
  0x4a   :  { %484 = vmatprep.subr.bf16.mxu1 %v644_v0  ;;  %501 = vmatpush3.bf16.msra.mxu0 %v540_v15 }
  0x4b   :  { %502 = vmatprep.subr.bf16.mxu0 %v644_v0 }
  0x4d   :  { %485 = vmatpush3.bf16.msra.mxu1 %v534_v9 }
  0x4e   :  { %486 = vmatprep.subr.bf16.mxu1 %v644_v0  ;;  %503 = vmatpush3.bf16.msra.mxu0 %v541_v16 }
  0x4f   :  { %504 = vmatprep.subr.bf16.mxu0 %v644_v0 }
  0x51   :  { %487 = vmatpush3.bf16.msra.mxu1 %v535_v10 }
  0x52   :  { %488 = vmatprep.subr.bf16.mxu1 %v644_v0  ;;  %505 = vmatpush3.bf16.msra.mxu0 %v542_v17 }
  0x53   :  { %506 = vmatprep.subr.bf16.mxu0 %v644_v0 }
  0x55   :  { %489 = vmatpush3.bf16.msra.mxu1 %v536_v11 }
  0x56   :  { %514 = vmatprep.subr.bf16.mxu1 %v644_v0  ;;  %507 = vmatpush3.bf16.msra.mxu0 %v543_v26 }
  0x57   :  { %508 = vmatprep.subr.bf16.mxu0 %v644_v0 }
  0x5a   :  { %509 = vmatpush3.bf16.msra.mxu0 %v544_v27 }
 0x10f   :  { %v129_v19 = vpop.f32.mrb[0].mxu0 }
 0x110   :  { %v130_v20 = vadd.f32 %v425_v18, %v129_v19  ;;  %v472_v21 = vpop.f32.mrb[1].mxu0 }
 0x111   :  { %v132_v22 = vpop.f32.mrb[2].mxu0 }
 0x112   :  { %v135_v23 = vmax.f32 %v130_v20, 0.0  ;;  %v473_v24 = vpop.f32.mrb[3].mxu0 }
 0x114   :  { %v136_v25 = vpack.c.bf16 %v135_v23, %v135_v23 }
 0x116   :  { %491 = vmatmul.mubr.bf16.vlgmr.msra.gmra.mrb[0].mxu1 %v136_v25 }
 0x117   :  { %516 = vmatprep.mubr.msk.bf16.mxu1 %vm645_vm0, %v644_v0 }
 0x1e9   :  { %v242_v29 = vpop.f32.mrb[0].mxu1 }
 0x1ea   :  { %v243_v30 = vadd.f32 %v428_v28, %v242_v29  ;;  %v492_v31 = vpop.f32.mrb[1].mxu1 }
 0x1eb   :  { %v245_v32 = vpop.f32.mrb[2].mxu1 }
 0x1ec   :  { %v248_v33 = vmax.f32 %v243_v30, 0.0  ;;  %v493_v34 = vpop.f32.mrb[3].mxu1 }
 0x1ee   :  { %v249_v35 = vpack.c.bf16 %v248_v33, %v248_v33 }
 0x1f0   :  { %511 = vmatmul.mubr.bf16.vlgmr.msra.gmra.mrb[4].mxu0 %v249_v35 }
 0x2c3   :  { %v355_v37 = vpop.f32.mrb[4].mxu0 }
 0x2c4   :  { %v356_v38 = vadd.f32 %v437_v36, %v355_v37  ;;  %v512_v39 = vpop.f32.mrb[5].mxu0 }
 0x2c5   :  { %v358_v40 = vpop.f32.mrb[6].mxu0 }
 0x2c6   :  { %v361_v41 = vmax.f32 %v356_v38, 0.0  ;;  %v513_v42 = vpop.f32.mrb[7].mxu0 }
 0x2c8   :  { %v363_v43 = vpack.c.bf16 %v361_v41, %v361_v41 }
 0x2ca   :  { %515 = vmatpush3.bf16.xpose.msra.mxu1 %v363_v43 }
 0x2d1   :  { %517 = vmatmul.mubr.bf16.vlgmr.msra.gmra.mrb[4].mxu1 %v362_v44 }
 0x3a4   :  { %v398_v46 = vpop.f32.mrb[4].mxu1 }
 0x3a5   :  { %v406_v47 = vadd.f32 %v405_v45, %v398_v46  ;;  %v518_v48 = vpop.f32.mrb[5].mxu1 }
 0x3a6   :  { %v401_v49 = vpop.f32.mrb[6].mxu1 }
 0x3a7   :  { %v519_v50 = vpop.f32.mrb[7].mxu1  ;;  %408 = vst.msk [vmem:[#allocation9] sm:$0x1] %vm407_vm2, %v406_v47 }
 0x3a8   :  { %622 = shalt.err (!%p619_p0)
}
 0x3a9   :  { %s623_s10 = scalar_lea.hbm %s804_s9, 16 }
 0x3aa   :  { %p624_p1 = scmp.ne.s32.totalorder %s804_s9, %s623_s10  ;;  %p627_p2 = scmp.lt.u32.totalorder %s623_s10, %s804_s9 }
 0x3ac   :  { %p629_p3 = pnand %p627_p2, %p624_p1 }
 0x3ae   :  { %632 = shalt.err (!%p629_p3)
}
 0x3af   :  { %418 = dma.vmem_to_hbm [thread:$0]  %s416_s13, 16, %s804_s9, [#allocation5]  }
 0x3b0   :  { %637 = dma.done.wait [#allocation5], 16  }
 0x3b1   :  { %638 = vsyncadd [#allocation5], 4294967280 }
 0x3b2   :  { %422 = vsyncpa [#allocation4], 1 }
 0x3b3   :  { %423 = vsyncpa [#allocation7], 1 }
 0x3b4   :  { %424 = vsyncpa [#allocation5], 1 }

</bundles_post_ra>
